<compile_context>
chip_gen: v7x
topology: tpu7x:2x2x1
jax: 0.10.0
libtpu: 0.0.40
codegen_flags: <defaults>
</compile_context>

<pallas_src>
import math
from functools import partial

import jax
import jax.numpy as jnp
from jax import lax
from jax.experimental import pallas as pl
from jax.experimental.pallas import tpu as pltpu

NEG_INF = -1e30   # large finite negative (avoids -inf - -inf NaN hazards)
LANES = 128


def _pick_tile(n, candidates):
    """Largest candidate tile that divides n; fall back to the full extent."""
    for t in candidates:
        if n % t == 0:
            return t
    return n


# ----------------------------------------------------------------------------
# Tiled matmul kernel
# ----------------------------------------------------------------------------
def _matmul_kernel(x_ref, w_ref, o_ref, *scratch, compute_dtype):
    # f32 outputs accumulate directly into the resident output block; otherwise
    # accumulate into an f32 VMEM scratch and cast on the last K step.
    acc_ref = scratch[0] if scratch else o_ref

    @pl.when(pl.program_id(2) == 0)
    def _():
        acc_ref[...] = jnp.zeros(acc_ref.shape, acc_ref.dtype)

    x = x_ref[...]
    w = w_ref[...]
    if compute_dtype is not None:
        x = x.astype(compute_dtype)
        w = w.astype(compute_dtype)
    acc_ref[...] += jnp.dot(x, w, preferred_element_type=jnp.float32)

    if scratch:  # static
        @pl.when(pl.program_id(2) == pl.num_programs(2) - 1)
        def _():
            o_ref[...] = acc_ref[...].astype(o_ref.dtype)


def pallas_matmul(x, w, compute_dtype=None):
    """x: (M, K), w: (K, N) -> (M, N).  Tiled MXU matmul, K-reduction axis last."""
    M, K = x.shape
    K2, N = w.shape
    assert K == K2

    tm = _pick_tile(M, (256, 128, 64, 32, 16, 8))
    tn = _pick_tile(N, (256, 512, 128))
    tk = _pick_tile(K, (512, 256, 1024, 128))
    # v7x shards "parallel" grid axes across 2 TensorCores: keep >= 2 parallel blocks.
    if (M // tm) * (N // tn) < 2:
        if tm >= 16 and M % (tm // 2) == 0:
            tm //= 2
        elif tn >= 256 and N % (tn // 2) == 0:
            tn //= 2
    grid = (M // tm, N // tn, K // tk)

    acc_in_output = jnp.dtype(x.dtype) == jnp.float32
    scratch_shapes = [] if acc_in_output else [pltpu.VMEM((tm, tn), jnp.float32)]

    itemsize = jnp.dtype(x.dtype).itemsize
    cost = pl.CostEstimate(
        flops=2 * M * N * K,
        transcendentals=0,
        bytes_accessed=itemsize * (M * K + K * N + M * N),
    )

    return pl.pallas_call(
        partial(_matmul_kernel, compute_dtype=compute_dtype),
        out_shape=jax.ShapeDtypeStruct((M, N), x.dtype),
        grid_spec=pltpu.PrefetchScalarGridSpec(
            num_scalar_prefetch=0,
            grid=grid,
            in_specs=[
                pl.BlockSpec((tm, tk), lambda i, j, k: (i, k)),
                pl.BlockSpec((tk, tn), lambda i, j, k: (k, j)),
            ],
            out_specs=pl.BlockSpec((tm, tn), lambda i, j, k: (i, j)),
            scratch_shapes=scratch_shapes,
        ),
        compiler_params=pltpu.CompilerParams(
            dimension_semantics=("parallel", "parallel", "arbitrary")),
        cost_estimate=cost,
    )(x, w)


# ----------------------------------------------------------------------------
# Flash-style attention kernel (online softmax), reading packed QKV directly
# ----------------------------------------------------------------------------
def _rms_norm_tile(x, w, eps=1e-5):
    # matches torch RMSNorm: normalize in f32, cast back, scale by weight.
    xf = x.astype(jnp.float32)
    inv = lax.rsqrt(jnp.mean(xf * xf, axis=-1, keepdims=True) + eps)
    return (xf * inv).astype(x.dtype) * w.astype(x.dtype)


def _flash_attn_kernel(q_ref, k_ref, v_ref, qnw_ref, knw_ref, o_ref,
                       q_scr, m_scr, l_scr, acc_scr, *,
                       scale, kv_start, kv_block_off, block_k,
                       need_mask, use_qk_norm, compute_dtype):
    # q_ref: (1, tq, dh), k_ref/v_ref: (1, tk, dh), o_ref: (1, tq, dh)
    ki = pl.program_id(3)

    @pl.when(ki == 0)
    def _():
        m_scr[...] = jnp.full(m_scr.shape, NEG_INF, m_scr.dtype)
        l_scr[...] = jnp.zeros(l_scr.shape, l_scr.dtype)
        acc_scr[...] = jnp.zeros(acc_scr.shape, acc_scr.dtype)
        # normalize (optional) + scale q ONCE per q-tile, reuse across KV steps
        q = q_ref[0]
        if use_qk_norm:
            q = _rms_norm_tile(q, qnw_ref[...])
        q = q * jnp.asarray(scale, q.dtype)
        q_scr[...] = q.astype(q_scr.dtype)

    k = k_ref[0]
    v = v_ref[0]
    if use_qk_norm:
        k = _rms_norm_tile(k, knw_ref[...])
    if compute_dtype is not None:
        k = k.astype(compute_dtype)
        v = v.astype(compute_dtype)

    # QK^T contracting on D for both operands -> no explicit K transpose.
    s = lax.dot_general(q_scr[...], k, (((1,), (1,)), ((), ())),
                        preferred_element_type=jnp.float32)        # (tq, tk) f32

    if need_mask:  # static: only compiled when kv_start is not tk-aligned
        kv_idx = (kv_block_off + ki) * block_k + lax.broadcasted_iota(
            jnp.int32, (1, block_k), 1)
        # only the first processed KV block straddles kv_start
        valid = jnp.logical_or(ki > 0, kv_idx >= kv_start)
        s = jnp.where(valid, s, NEG_INF)

    m_prev = m_scr[...]                                   # (tq, LANES), lane-replicated
    m_cur = jnp.max(s, axis=-1, keepdims=True)            # (tq, 1)
    m_new = jnp.maximum(m_prev, m_cur)                    # (tq, LANES)
    alpha = jnp.exp(m_prev - m_new)                       # (tq, LANES)
    m_scr[...] = m_new

    row_max = m_new if s.shape[-1] == m_new.shape[-1] else m_new[:, :1]
    p = jnp.exp(s - row_max)                              # (tq, tk) f32
    if need_mask:
        p = jnp.where(valid, p, 0.0)   # guard against a fully-masked block (defensive)
    l_scr[...] = alpha * l_scr[...] + jnp.sum(p, axis=-1, keepdims=True)

    pv = jnp.dot(p.astype(v.dtype), v, preferred_element_type=jnp.float32)   # (tq, dh)
    alpha_acc = alpha if acc_scr.shape[-1] == alpha.shape[-1] else alpha[:, :1]
    acc_scr[...] = alpha_acc * acc_scr[...] + pv

    @pl.when(ki == pl.num_programs(3) - 1)
    def _():
        l = l_scr[...]
        r = pl.reciprocal(l, approx=True)   # EUP slot
        r = r * (2.0 - l * r)               # one Newton step -> ~f32 accuracy
        r_out = r if acc_scr.shape[-1] == r.shape[-1] else r[:, :1]
        o_ref[0] = (acc_scr[...] * r_out).astype(o_ref.dtype)


def pallas_flash_attention_packed(qkv, nh, head_dim, *, q_len=None, kv_start=0,
                                  use_qk_norm=False, q_norm_w=None, k_norm_w=None,
                                  compute_dtype=None):
    """qkv: (B, L, 3*nh*head_dim) packed [q | k | v] along the last axis.

    Reads q/k/v head tiles straight from `qkv` via BlockSpec index_maps (no
    head-split transpose) and writes the output already merged as
    (B, q_len, nh*head_dim).  Attends the first `q_len` queries against keys
    with index >= kv_start (online softmax over KV tiles).
    """
    B, L, three_dim = qkv.shape
    dim = nh * head_dim
    assert three_dim == 3 * dim
    assert head_dim % 128 == 0, "packed-qkv fast path requires lane-dense heads"
    # TODO(synk): add a fallback layout for head_dim not a multiple of 128.

    Lq = L if q_len is None else int(q_len)
    Lk = L
    scale = 1.0 / math.sqrt(head_dim)

    # tk=256 fills the 256-wide MXU (v6e/v7x); tq=128 keeps f32 s/p within vregs.
    tk = _pick_tile(Lk, (256, 128, 512, 64, 32, 16, 8))
    tq = _pick_tile(Lq, (128, 256, 64, 32, 16, 8))

    kv_block_off = kv_start // tk                 # skip whole leading KV tiles
    num_kv_blocks = (Lk // tk) - kv_block_off
    need_mask = (kv_start % tk) != 0              # boundary tile needs masking
    grid = (B, nh, Lq // tq, num_kv_blocks)

    if q_norm_w is None:
        q_norm_w = jnp.ones((head_dim,), qkv.dtype)
    if k_norm_w is None:
        k_norm_w = jnp.ones((head_dim,), qkv.dtype)
    qnw = jnp.asarray(q_norm_w).reshape(1, head_dim)
    knw = jnp.asarray(k_norm_w).reshape(1, head_dim)

    qc_dtype = compute_dtype if compute_dtype is not None else qkv.dtype

    lk_eff = Lk - kv_start
    itemsize = jnp.dtype(qkv.dtype).itemsize
    cost = pl.CostEstimate(
        flops=4 * B * nh * Lq * lk_eff * head_dim,
        transcendentals=B * nh * Lq * lk_eff,
        bytes_accessed=itemsize * (2 * B * nh * Lq * head_dim
                                   + 2 * B * nh * lk_eff * head_dim),
    )

    kernel = partial(_flash_attn_kernel, scale=scale, kv_start=kv_start,
                     kv_block_off=kv_block_off, block_k=tk, need_mask=need_mask,
                     use_qk_norm=use_qk_norm, compute_dtype=compute_dtype)

    return pl.pallas_call(
        kernel,
        out_shape=jax.ShapeDtypeStruct((B, Lq, dim), qkv.dtype),
        grid_spec=pltpu.PrefetchScalarGridSpec(
            num_scalar_prefetch=0,
            grid=grid,
            in_specs=[
                # q head h lives in column block h of the packed qkv
                pl.BlockSpec((1, tq, head_dim),
                             lambda b, h, qi, ki: (b, qi, h)),
                # k head h: column block nh + h, KV tiles offset by kv_block_off
                pl.BlockSpec((1, tk, head_dim),
                             lambda b, h, qi, ki: (b, ki + kv_block_off, nh + h)),
                # v head h: column block 2*nh + h
                pl.BlockSpec((1, tk, head_dim),
                             lambda b, h, qi, ki: (b, ki + kv_block_off, 2 * nh + h)),
                pl.BlockSpec((1, head_dim), lambda b, h, qi, ki: (0, 0)),   # q_norm w
                pl.BlockSpec((1, head_dim), lambda b, h, qi, ki: (0, 0)),   # k_norm w
            ],
            # output written directly in (B, Lq, nh*head_dim) layout (lane-dense)
            out_specs=pl.BlockSpec((1, tq, head_dim),
                                   lambda b, h, qi, ki: (b, qi, h)),
            scratch_shapes=[
                pltpu.VMEM((tq, head_dim), qc_dtype),     # scaled (+normed) q tile
                pltpu.VMEM((tq, LANES), jnp.float32),     # running max (lane-dense)
                pltpu.VMEM((tq, LANES), jnp.float32),     # running denom (lane-dense)
                pltpu.VMEM((tq, head_dim), jnp.float32),  # output accumulator
            ],
        ),
        compiler_params=pltpu.CompilerParams(
            dimension_semantics=("parallel", "parallel", "parallel", "arbitrary")),
        cost_estimate=cost,
    )(qkv, qkv, qkv, qnw, knw)


# ----------------------------------------------------------------------------
# SubsetAttention forward (wrapper)
# ----------------------------------------------------------------------------
def subset_attention_forward(
    x,
    w_qkv,          # (dim, 3*dim)  == torch to_qkv.weight.T
    w_fc,           # (dim, dim)    == torch fc.weight.T
    head_dim,
    subset_kv_size=None,
    subset_q_size=None,
    use_qk_norm=False,
    q_norm_w=None,
    k_norm_w=None,
    mxu_dtype=None,   # e.g. jnp.bfloat16 to run MXU operands in bf16 (f32 acc)
):
    assert not (subset_kv_size is not None and subset_q_size is not None)
    B, L, dim = x.shape
    nh = dim // head_dim

    # ---- QKV projection (tiled Pallas matmul); only zero-cost reshapes after ----
    qkv = pallas_matmul(x.reshape(B * L, dim), w_qkv,
                        compute_dtype=mxu_dtype).reshape(B, L, 3 * dim)

    # ---- subset handling expressed as kernel grid / index_map offsets ----
    kv_start = 0
    q_len = None
    if subset_kv_size is not None and subset_kv_size < L:
        kv_start = int(subset_kv_size)        # attend to keys >= kv_start (no HBM copy)
    elif subset_q_size is not None and subset_q_size < L:
        q_len = int(subset_q_size)            # only first q_len queries (prefix read)
    # note: subset size == L falls through to full attention, matching the torch spec.

    # ---- attention (flash-style, reads packed qkv, writes merged layout) ----
    o = pallas_flash_attention_packed(
        qkv, nh, head_dim, q_len=q_len, kv_start=kv_start,
        use_qk_norm=use_qk_norm, q_norm_w=q_norm_w, k_norm_w=k_norm_w,
        compute_dtype=mxu_dtype)                                  # (B, Lq, dim)
    Lq = o.shape[1]

    # ---- output projection (consumes o as-is, no transpose) ----
    out = pallas_matmul(o.reshape(B * Lq, dim), w_fc,
                        compute_dtype=mxu_dtype).reshape(B, Lq, dim)
    # attn_dropout / attn_fc_dropout are identity at inference -> no-op
    return out


# ----------------------------------------------------------------------------
# Pure-JAX reference for verification
# ----------------------------------------------------------------------------
def rms_norm(x, weight, eps=1e-5):
    xf = x.astype(jnp.float32)
    normed = xf * jax.lax.rsqrt(jnp.mean(xf * xf, axis=-1, keepdims=True) + eps)
    return normed.astype(x.dtype) * weight.astype(x.dtype)


def reference_forward(x, w_qkv, w_fc, head_dim, subset_kv_size=None, subset_q_size=None,
                      use_qk_norm=False, q_norm_w=None, k_norm_w=None):
    B, L, dim = x.shape
    nh = dim // head_dim
    qkv = x @ w_qkv
    q, k, v = jnp.split(qkv, 3, axis=-1)
    q = q.reshape(B, L, nh, head_dim)
    k = k.reshape(B, L, nh, head_dim)
    v = v.reshape(B, L, nh, head_dim)
    if use_qk_norm:
        q = rms_norm(q, q_norm_w)
        k = rms_norm(k, k_norm_w)
    if subset_kv_size is not None and subset_kv_size < L:
        k = k[:, subset_kv_size:]
        v = v[:, subset_kv_size:]
    elif subset_q_size is not None and subset_q_size < L:
        q = q[:, :subset_q_size]
    scale = 1.0 / math.sqrt(head_dim)
    s = jnp.einsum("bqhd,bkhd->bhqk", q, k) * scale
    p = jax.nn.softmax(s, axis=-1)
    o = jnp.einsum("bhqk,bkhd->bqhd", p, v)
    o = o.reshape(B, o.shape[1], dim)
    return o @ w_fc


# ----------------------------------------------------------------------------
if __name__ == "__main__":
    B, L, dim, head_dim = 2, 256, 256, 128   # nh = 2, lane-dense head_dim

    key = jax.random.PRNGKey(0)
    k1, k2, k3 = jax.random.split(key, 3)
    x = jax.random.normal(k1, (B, L, dim), dtype=jnp.float32)
    w_qkv = jax.random.normal(k2, (dim, 3 * dim), dtype=jnp.float32) * 0.05
    w_fc = jax.random.normal(k3, (dim, dim), dtype=jnp.float32) * 0.05
    q_norm_w = jnp.linspace(0.5, 1.5, head_dim, dtype=jnp.float32)
    k_norm_w = jnp.linspace(1.5, 0.5, head_dim, dtype=jnp.float32)

    # case 1: full attention
    out_full = subset_attention_forward(x, w_qkv, w_fc, head_dim)
    # case 2: subset of keys/values, not tile-aligned (exercises boundary mask)
    out_kv_mask = subset_attention_forward(x, w_qkv, w_fc, head_dim, subset_kv_size=160)
    # case 3: subset of keys/values at a different offset
    out_kv_aligned = subset_attention_forward(x, w_qkv, w_fc, head_dim, subset_kv_size=128)
    # case 4: subset of queries
    out_q = subset_attention_forward(x, w_qkv, w_fc, head_dim, subset_q_size=128)
    # case 5: full attention with fused QK RMSNorm
    out_norm = subset_attention_forward(x, w_qkv, w_fc, head_dim,
                                        use_qk_norm=True, q_norm_w=q_norm_w,
                                        k_norm_w=k_norm_w)
    # case 6: bf16 MXU operands (f32 accumulation) — production-dtype fast path
    out_bf16 = subset_attention_forward(x, w_qkv, w_fc, head_dim,
                                        mxu_dtype=jnp.bfloat16)

    jax.block_until_ready((out_full, out_kv_mask, out_kv_aligned,
                           out_q, out_norm, out_bf16))

    ref_full = reference_forward(x, w_qkv, w_fc, head_dim)
    ref_kv_mask = reference_forward(x, w_qkv, w_fc, head_dim, subset_kv_size=160)
    ref_kv_aligned = reference_forward(x, w_qkv, w_fc, head_dim, subset_kv_size=128)
    ref_q = reference_forward(x, w_qkv, w_fc, head_dim, subset_q_size=128)
    ref_norm = reference_forward(x, w_qkv, w_fc, head_dim,
                                 use_qk_norm=True, q_norm_w=q_norm_w, k_norm_w=k_norm_w)

    assert out_full.shape == (B, L, dim)
    assert out_kv_mask.shape == (B, L, dim)
    assert out_kv_aligned.shape == (B, L, dim)
    assert out_q.shape == (B, 128, dim)
    assert out_norm.shape == (B, L, dim)
    assert out_bf16.shape == (B, L, dim)

    tol = dict(atol=5e-4, rtol=5e-4)
    assert jnp.allclose(out_full, ref_full, **tol)
    assert jnp.allclose(out_kv_mask, ref_kv_mask, **tol)
    assert jnp.allclose(out_kv_aligned, ref_kv_aligned, **tol)
    assert jnp.allclose(out_q, ref_q, **tol)
    assert jnp.allclose(out_norm, ref_norm, **tol)
    # bf16-operand path: loose tolerance vs the f32 reference
    assert jnp.allclose(out_bf16, ref_full, atol=1e-1, rtol=1e-1)

    print("KERNEL_OK")
</pallas_src>

<mosaic_0001>
module attributes {stable_mosaic.version = 11 : i64} {
  func.func @_matmul_kernel(%arg0: i32, %arg1: i32, %arg2: i32, %arg3: memref<256x256xf32, #tpu.memory_space<vmem>>, %arg4: memref<256x256xf32, #tpu.memory_space<vmem>>, %arg5: memref<256x256xf32, #tpu.memory_space<vmem>>) attributes {dimension_semantics = [#tpu.dimension_semantics<parallel>, #tpu.dimension_semantics<parallel>, #tpu.dimension_semantics<arbitrary>], iteration_bounds = array<i64: 2, 3, 1>, scalar_prefetch = 0 : i64, scratch_operands = 0 : i64, tpu.core_type = #tpu.core_type<tc>, window_params = [{transform_indices = @transform_0, window_bounds = array<i64: 256, 256>}, {transform_indices = @transform_1, window_bounds = array<i64: 256, 256>}, {transform_indices = @transform_2, window_bounds = array<i64: 256, 256>}]} {
    %c0_i32 = arith.constant 0 : i32
    %0 = arith.cmpi eq, %arg2, %c0_i32 : i32
    %1 = arith.extui %0 : i1 to i32
    %c0_i32_0 = arith.constant 0 : i32
    %2 = arith.cmpi ne, %1, %c0_i32_0 : i32
    scf.if %2 {
      %cst_8 = arith.constant 0.000000e+00 : f32
      %9 = vector.broadcast %cst_8 : f32 to vector<256x256xf32>
      %c0_9 = arith.constant 0 : index
      %c0_10 = arith.constant 0 : index
      %10 = vector.load %arg5[%c0_9, %c0_10] : memref<256x256xf32, #tpu.memory_space<vmem>>, vector<256x256xf32>
      tpu.vector_store %arg5[%c0_9, %c0_10], %9 {strides = array<i32>} : memref<256x256xf32, #tpu.memory_space<vmem>>, vector<256x256xf32>,
    } else {
    }
    %c0 = arith.constant 0 : index
    %c0_1 = arith.constant 0 : index
    %3 = vector.load %arg3[%c0, %c0_1] : memref<256x256xf32, #tpu.memory_space<vmem>>, vector<256x256xf32>
    %c0_2 = arith.constant 0 : index
    %c0_3 = arith.constant 0 : index
    %4 = vector.load %arg4[%c0_2, %c0_3] : memref<256x256xf32, #tpu.memory_space<vmem>>, vector<256x256xf32>
    %c0_4 = arith.constant 0 : index
    %c0_5 = arith.constant 0 : index
    %5 = vector.load %arg5[%c0_4, %c0_5] : memref<256x256xf32, #tpu.memory_space<vmem>>, vector<256x256xf32>
    %cst = arith.constant dense<0.000000e+00> : vector<256x256xf32>
    %6 = tpu.matmul %3, %4, %cst {dimension_numbers = #tpu.dot_dimension_numbers<[1], [0], [0], [1], [0, 0, 1, 1], [], []>} : vector<256x256xf32>, vector<256x256xf32>, vector<256x256xf32> -> vector<256x256xf32>
    %7 = arith.addf %5, %6 : vector<256x256xf32>
    %c0_6 = arith.constant 0 : index
    %c0_7 = arith.constant 0 : index
    %8 = vector.load %arg5[%c0_6, %c0_7] : memref<256x256xf32, #tpu.memory_space<vmem>>, vector<256x256xf32>
    tpu.vector_store %arg5[%c0_6, %c0_7], %7 {strides = array<i32>} : memref<256x256xf32, #tpu.memory_space<vmem>>, vector<256x256xf32>,
    return
  }
  func.func @transform_0(%arg0: i32, %arg1: i32, %arg2: i32) -> (i32, i32) {
    %c0_i32 = arith.constant 0 : i32
    return %arg0, %arg2 : i32, i32
  }
  func.func @transform_1(%arg0: i32, %arg1: i32, %arg2: i32) -> (i32, i32) {
    %c0_i32 = arith.constant 0 : i32
    return %arg2, %arg1 : i32, i32
  }
  func.func @transform_2(%arg0: i32, %arg1: i32, %arg2: i32) -> (i32, i32) {
    %c0_i32 = arith.constant 0 : i32
    return %arg0, %arg1 : i32, i32
  }
}

</mosaic_0001>

<bundles_post_ra>
// kernel: tpu_custom_call.1
= control target key start
LH: loop header
LB: loop body
LE: loop exit
PB: predicated region body
PF: predicated region fallthrough
CT: control target
= control target key end

     0   :  { %s2064_s0 = inlined_call_operand.hbm [shape: f32[512,256], index: 0, kind: input, shape index: {}]   ;;  %s2065_s1 = inlined_call_operand.hbm [shape: f32[256,768], index: 1, kind: input, shape index: {}]   ;;  %s2066_s2 = inlined_call_operand.hbm [shape: f32[512,768], index: 2, kind: output, shape index: {}]  }
   0x1   :  { %2080 = sst [smem:[#allocation17_spill]] %s2064_s0 }
   0x2   :  { %2081 = sst [smem:[#allocation18_spill]] %s2066_s2 }
   0x3   :  { %7 = vsyncpa [#allocation3], 0 }
   0x4   :  { %9 = vsyncpa [#allocation3 + $0x1], 0 }
   0x5   :  { %10 = vsyncpa [#allocation6], 0 }
   0x6   :  { %12 = vsyncpa [#allocation6 + $0x1], 0 }
   0x7   :  { %13 = vsyncpa [#allocation4], 0 }
   0x8   :  { %15 = vsyncpa [#allocation4 + $0x1], 0  ;;  %s1516_s9 = smov 0   ;;  %s1518_s10 = smov 0  }
   0x9   :  { %s1520_s11 = smov 0   ;;  %s1522_s12 = smov 0  }
   0xa   :  { %s1524_s13 = smov 0   ;;  %s1526_s14 = smov 0  }
   0xb   :  { %s1528_s15 = smov 0   ;;  %s1530_s16 = smov 0  }
   0xc   :  { %s1532_s17 = smov 0   ;;  %s1534_s18 = smov 0  }
   0xd   :  { %s1536_s19 = smov 0   ;;  %s1538_s20 = smov 0  }
   0xe   :  { %s1540_s21 = smov 0   ;;  %s1542_s22 = smov 0  }
   0xf LB: > { %2082 = sst [smem:[#allocation11_spill]] %s1474_s18  ;;  %s1020_s23 = sadd.s32 4294967295, %s1490_s22   ;;  %s1490_s22 = sphi %s1542_s22, %s21_s22   ;;  %s1486_s21 = sphi %s1540_s21, %s2116_s21   ;;  %s1482_s20 = sphi %s1538_s20, %s2127_s20   ;;  %s1478_s19 = sphi %s1536_s19, %s2114_s19   ;;  %s1474_s18 = sphi %s1534_s18, %s2126_s18   ;;  %s1470_s17 = sphi %s1532_s17, %s2125_s17   ;;  %s1466_s16 = sphi %s1530_s16, %s2124_s16   ;;  %s1462_s15 = sphi %s1528_s15, %s2123_s15   ;;  %s1458_s14 = sphi %s1526_s14, %s2122_s14   ;;  %s1454_s13 = sphi %s1524_s13, %s2121_s13   ;;  %s1450_s12 = sphi %s1522_s12, %s2120_s12   ;;  %s1446_s11 = sphi %s1520_s11, %s2119_s11   ;;  %s1442_s10 = sphi %s1518_s10, %s2118_s10   ;;  %s1438_s9 = sphi %s1516_s9, %s2117_s9  }
  0x10   : > { %2083 = sst [smem:[#allocation12_spill]] %s1486_s21  ;;  %s40_s24 = sadd.s32 1, %s1486_s21 }
  0x11   : > { %p56_p0 = scmp.ne.s32.totalorder %s1470_s17, %s1466_s16  ;;  %p2068_p1 = scmp.eq.s32.totalorder %s1490_s22, 0 }
  0x12   : > { %p62_p2 = scmp.ne.s32.totalorder %s1466_s16, %s1462_s15  ;;  %p1591_p3 = scmp.eq.s32.totalorder %s1020_s23, 0 }
  0x13   : > { %p1595_p4 = scmp.eq.s32.totalorder %s1020_s23, 5  ;;  %p58_p5 = por %p2068_p1, %p56_p0 }
  0x14   : > { %p1603_p6 = por %p1591_p3, %p62_p2  ;;  %p2067_p7 = scmp.lt.s32.totalorder %s1490_s22, 6 }
  0x15   : > { %s2085_s27 = scalar_select %p1595_p4, 1, 0 }
  0x16   : > { %s2086_s28 = scalar_select %p1603_p6, 1, 0 }
  0x17   : > { %s142_s29 = sand.u32 1, %s1470_s17   ;;  %s1043_s30 = sshll.u32 %s1486_s21, 13 }
  0x18   : > { %s1024_s3 = sshll.u32 %s142_s29, 9  ;;  %s2087_s0 = sld [smem:[#allocation17_spill]] }
  0x19   : > { %s146_s7 = scalar_lea.vmem [#allocation2], %s1024_s3  ;;  %p1617_p8 = pnand %p2067_p7, %p58_p5 }
  0x1a   : > { %s156_s8 = sshll.u32 %s146_s7, 4  ;;  %s1623_s23 = scalar_lea.sflag [#allocation3], %s142_s29  ;;  %s1621_s8 = int_to_ptr.vmem [resolvable:$true] %s156_s8 }
  0x1b   : > { %p1282_p10 = pneg %p1617_p8 }
  0x1e   : > { %s1613_s6 = scalar_lea.hbm %s2087_s0, %s1043_s30  ;;  %s1285_s5 = scalar_lea.hbm %s2087_s0, 16384 }
  0x1f   : > { %s1280_s4 = scalar_lea.hbm %s1613_s6, 8192  ;;  %p1286_p13 = scmp.lt.u32.totalorder %s1613_s6, %s2087_s0 }
  0x20   : > { %p1281_p9 = scmp.ne.s32.totalorder %s1613_s6, %s1280_s4  ;;  %p1287_p0 = scmp.lt.u32.totalorder %s1285_s5, %s1280_s4 }
  0x21   : > { %p1289_p5 = scmp.lt.u32.totalorder %s1280_s4, %s1613_s6 }
  0x22   : > { %p1283_p11 = pnand %p1282_p10, %p1281_p9  ;;  %p1288_p2 = por %p1287_p0, %p1286_p13 }
  0x24   : > { %p1284_p12 = pneg %p1283_p11  ;;  %p1290_p7 = por %p1289_p5, %p1288_p2 }
  0x26   : > { %p1291_p1 = pnand %p1290_p7, %p1284_p12 }
  0x28   : > { %1294 = shalt.err (!%p1291_p1)
}
  0x29   : > { %s1295_s29 = scalar_lea.vmem %s1621_s8, 8192  ;;  %s1492_s30 = smov [#allocation2]  }
  0x2a   : > { %p1296_p9 = scmp.ne.s32.totalorder %s1621_s8, %s1295_s29  ;;  %s1300_s3 = sshll.u32 %s1492_s30, 4  ;;  %s1301_s3 = int_to_ptr.vmem [resolvable:$false] %s1300_s3 }
  0x2b   : > { %s1302_s25 = scalar_lea.vmem %s1301_s3, 16384  ;;  %p1303_p4 = scmp.lt.s32.totalorder %s1621_s8, %s1301_s3 }
  0x2c   : > { %p1298_p11 = pnand %p1296_p9, %p1282_p10  ;;  %p1304_p13 = scmp.lt.s32.totalorder %s1302_s25, %s1295_s29 }
  0x2e   : > { %p1299_p6 = pneg %p1298_p11  ;;  %p1305_p0 = por %p1304_p13, %p1303_p4 }
  0x30   : > { %p1306_p2 = pnand %p1305_p0, %p1299_p6 }
  0x32   : > { %1309 = shalt.err (!%p1306_p2)
}
  0x33   : > { %s2070_s4 = smov 256   ;;  %s2071_s5 = smov 16  }
  0x34   : > { %1151 = dma.hbm_to_vmem [thread:$0]  (!%p1617_p8), %s1613_s6, 8192, %s1621_s8, %s1623_s23, %s2070_s4, %s2070_s4, %s2071_s5  }
  0x35   : > { %p1031_p1 = scmp.ge.s32.totalorder %s1490_s22, 1  ;;  %p188_p4 = scmp.lt.s32.totalorder %s1490_s22, 7 }
  0x36   : > { %s1021_s29 = sadd.s32 4294967294, %s1490_s22   ;;  %s36_s30 = sadd.s32 1, %s1482_s20 }
  0x37   : > { %p1656_p6 = pnand %p1031_p1, %p188_p4  ;;  %s77_s3 = sadd.s32 1, %s1458_s14 }
  0x38   : > { %p38_p7 = scmp.ge.s32.totalorder %s36_s30, 3  ;;  %p84_p10 = scmp.ne.s32.totalorder %s1458_s14, %s1454_s13 }
  0x39   : > { %p90_p12 = scmp.ne.s32.totalorder %s1454_s13, %s1450_s12  ;;  %s105_s15 = sadd.s32 1, %s1446_s11 }
  0x3a   : > { %s2129_s30 = smov (%p38_p7, %s36_s30), 0  ;;  %s2131_s24 = smov (!%p38_p7, %s40_s24), %s1486_s21 }
  0x3b   : > { %2090 = sst [smem:[#allocation13_spill]] %s2129_s30  ;;  %s73_s6 = ssub.s32 %s1482_s20, %s2129_s30 }
  0x3c   : > { %p2091_p8 = scmp.eq.s32.totalorder %s1490_s22, 0  ;;  %p42_p9 = scmp.ge.s32.totalorder %s2131_s24, 2 }
  0x3d   : > { %p75_p11 = scmp.eq.s32.totalorder %s73_s6, 0  ;;  %p1683_p13 = por %p90_p12, %p1591_p3 }
  0x3e   : > { %p1677_p5 = por %p84_p10, %p2091_p8  ;;  %p115_p0 = scmp.ne.s32.totalorder %s1446_s11, %s1442_s10 }
  0x3f   : > { %s2093_s12 = scalar_select %p1683_p13, 1, 0 }
  0x40   : > { %s2133_s24 = smov (%p42_p9, %s2131_s24), 0  ;;  %p2096_p2 = scmp.ne.s32.totalorder %s2085_s27, 0 }
  0x41   : > { %2094 = sst [smem:[#allocation14_spill]] %s2133_s24  ;;  %s44_s25 = ssub.s32 %s1486_s21, %s2133_s24 }
  0x42   : > { %s1692_s23 = scalar_select %p75_p11, %s1458_s14, %s77_s3  }
  0x43   : > { %p1698_p1 = por %p2096_p2, %p115_p0  ;;  %p47_p4 = scmp.eq.s32.totalorder %s44_s25, 0 }
  0x44   : > { %2095 = sst [smem:[#allocation15_spill]] %s1692_s23  ;;  %s102_s26 = sor.u32 %s73_s6, %s44_s25 }
  0x45   : > { %s2097_s4 = scalar_select %p1698_p1, 1, 0 }
  0x46   : > { %p103_p3 = scmp.eq.s32.totalorder %s102_s26, 0  ;;  %p121_p7 = scmp.ne.s32.totalorder %s1442_s10, %s1438_s9 }
  0x47   : > { %2098 = sst [smem:[#allocation16_spill]] %s2097_s4  ;;  %s2099_s5 = sadd.s32 1, %s1470_s17 }
  0x48   : > { %s1707_s0 = scalar_select %p47_p4, %s1470_s17, %s2099_s5  }
  0x49   : > { %s1710_s30 = scalar_select %p103_p3, %s1446_s11, %s105_s15  }
  0x4a   : > { %p122_p10 = scmp.eq.s32.totalorder %s1021_s29, 5  ;;  %s166_s3 = sand.u32 1, %s1458_s14  }
  0x4b   : > { %s1028_s23 = sshll.u32 %s166_s3, 9  ;;  %s1044_s24 = sshll.u32 %s1482_s20, 8 }
  0x4c   : > { %p1713_p12 = por %p122_p10, %p121_p7  ;;  %s170_s21 = scalar_lea.vmem [#allocation5], %s1028_s23 }
  0x4d   : > { %s180_s2 = sshll.u32 %s170_s21, 4  ;;  %s1721_s6 = scalar_lea.hbm %s2065_s1, %s1044_s24  ;;  %s1723_s2 = int_to_ptr.vmem [resolvable:$true] %s180_s2 }
  0x4e   : > { %s2100_s27 = scalar_select %p1713_p12, 1, 0 }
  0x4f   : > { %p2101_p8 = scmp.lt.s32.totalorder %s1490_s22, 6  ;;  %s1733_s21 = scalar_lea.sflag [#allocation6], %s166_s3 }
  0x50   : > { %s1310_s29 = scalar_lea.hbm %s1721_s6, 8192  ;;  %s1315_s4 = scalar_lea.hbm %s2065_s1, 24576 }
  0x51   : > { %p1729_p9 = pnand %p2101_p8, %p1677_p5  ;;  %p1311_p11 = scmp.ne.s32.totalorder %s1721_s6, %s1310_s29 }
  0x52   : > { %p1316_p5 = scmp.lt.u32.totalorder %s1721_s6, %s2065_s1  ;;  %p1317_p3 = scmp.lt.u32.totalorder %s1315_s4, %s1310_s29 }
  0x53   : > { %p1312_p0 = pneg %p1729_p9  ;;  %p1319_p10 = scmp.lt.u32.totalorder %s1310_s29, %s1721_s6 }
  0x54   : > { %p1318_p7 = por %p1317_p3, %p1316_p5 }
  0x55   : > { %p1313_p2 = pnand %p1312_p0, %p1311_p11 }
  0x56   : > { %p1320_p8 = por %p1319_p10, %p1318_p7 }
  0x57   : > { %p1314_p4 = pneg %p1313_p2 }
  0x59   : > { %p1321_p12 = pnand %p1320_p8, %p1314_p4 }
  0x5b   : > { %1324 = shalt.err (!%p1321_p12)
}
  0x5c   : > { %s1325_s23 = scalar_lea.vmem %s1723_s2, 8192  ;;  %s1495_s25 = smov [#allocation5]  }
  0x5d   : > { %p1326_p11 = scmp.ne.s32.totalorder %s1723_s2, %s1325_s23  ;;  %s1330_s26 = sshll.u32 %s1495_s25, 4  ;;  %s1331_s26 = int_to_ptr.vmem [resolvable:$false] %s1330_s26 }
  0x5e   : > { %s1332_s3 = scalar_lea.vmem %s1331_s26, 16384  ;;  %p1333_p13 = scmp.lt.s32.totalorder %s1723_s2, %s1331_s26 }
  0x5f   : > { %p1328_p2 = pnand %p1326_p11, %p1312_p0  ;;  %p1334_p5 = scmp.lt.s32.totalorder %s1332_s3, %s1325_s23 }
  0x61   : > { %p1329_p1 = pneg %p1328_p2  ;;  %p1335_p3 = por %p1334_p5, %p1333_p13 }
  0x63   : > { %p1336_p7 = pnand %p1335_p3, %p1329_p1 }
  0x65   : > { %1339 = shalt.err (!%p1336_p7)
}
  0x66   : > { %s1496_s29 = smov 768   ;;  %s2103_s18 = smov 16  }
  0x67   : > { %s2104_s24 = smov 256   ;;  %192 = sbr.rel (%p1656_p6) target bundleno = 471 (0x1d7), region = 28 }
  0x68   : > { %1154 = dma.hbm_to_vmem [thread:$0]  (!%p1729_p9), %s1721_s6, 8192, %s1723_s2, %s1733_s21, %s1496_s29, %s2104_s24, %s2103_s18  }
  0x69   : > { %s194_s4 = sand.u32 (!%p1656_p6), 1, %s1466_s16   ;;  %p2105_p13 = scmp.ne.s32.totalorder (!%p1656_p6), %s2086_s28, 0 }
  0x6a   : > { %s1032_s15 = sshll.u32 (!%p1656_p6), %s194_s4, 9  ;;  %s195_s8 = scalar_lea.sflag (!%p1656_p6), [#allocation3], %s194_s4 }
  0x6b   : > { %s1766_s23 = scalar_lea.vmem (!%p1656_p6), [#allocation2], %s1032_s15 }
  0x6e   : > { %1425 = dma.done.wait (%p2105_p13), %s195_s8, 8192  }
  0x6f   : > { %1427 = vsyncadd (%p2105_p13), %s195_s8, 4294959104  ;;  %s203_s5 = sand.u32 1, %s1454_s13   ;;  %p2106_p6 = scmp.ne.s32.totalorder %s2093_s12, 0 }
  0x70   : > { %s1033_s25 = sshll.u32 %s203_s5, 9  ;;  %s204_s2 = scalar_lea.sflag [#allocation6], %s203_s5 }
  0x71   : > { %s1773_s6 = scalar_lea.vmem [#allocation5], %s1033_s25 }
  0x72   : > { %1429 = dma.done.wait (%p2106_p6), %s204_s2, 8192  }
  0x73   : > { %1431 = vsyncadd (%p2106_p6), %s204_s2, 4294959104  ;;  %v372_v0 = vld [vmem:[%s1773_s6 + $0x8] sm:$0xff]  ;;  %v374_v1 = vld [vmem:[%s1773_s6 + $0x18] sm:$0xff]  ;;  %s230_s28 = sand.u32 1, %s1442_s10   ;;  %s2107_s21 = sld [smem:[#allocation11_spill]] }
  0x74   : > { %v371_v2 = vld [vmem:[%s1773_s6] sm:$0xff]  ;;  %v1045_v3 = vpack.c.bf16 %v374_v1, %v372_v0  ;;  %v373_v4 = vld [vmem:[%s1773_s6 + $0x10] sm:$0xff]  ;;  %v376_v5 = vld [vmem:[%s1773_s6 + $0x28] sm:$0xff]  ;;  %s1034_s7 = sshll.u32 %s230_s28, 9  ;;  %s1141_s26 = smul.u32 192, %s1478_s19 }
  0x75   : > { %v378_v6 = vld [vmem:[%s1773_s6 + $0x38] sm:$0xff]  ;;  %v1047_v7 = vpack.c.bf16 %v373_v4, %v371_v2  ;;  %v375_v9 = vld [vmem:[%s1773_s6 + $0x20] sm:$0xff]  ;;  %v377_v10 = vld [vmem:[%s1773_s6 + $0x30] sm:$0xff]  ;;  %s1910_s12 = scalar_lea.vmem [#allocation7], %s1034_s7  ;;  %s2108_s24 = sld [smem:[#allocation16_spill]] }
  0x76   : > { %v1049_v8 = vpack.c.bf16 %v378_v6, %v376_v5  ;;  %v380_v11 = vld [vmem:[%s1773_s6 + $0x48] sm:$0xff]  ;;  %1046 = vmatprep.subr.bf16.mxu0 %v1045_v3  ;;  %1109 = vmatprep.subr.bf16.mxu1 %v1045_v3  ;;  %v382_v12 = vld [vmem:[%s1773_s6 + $0x58] sm:$0xff]  ;;  %v1051_v13 = vpack.c.bf16 %v377_v10, %v375_v9  ;;  %v379_v15 = vld [vmem:[%s1773_s6 + $0x40] sm:$0xff]  ;;  %s901_s18 = sshll.u32 %s1910_s12, 4  ;;  %s2109_s8 = sld [smem:[#allocation18_spill]]  ;;  %s1980_s18 = int_to_ptr.vmem [resolvable:$true] %s901_s18 }
  0x77   : > { %1048 = vmatpush1.bf16.msra.mxu0 %v1047_v7  ;;  %1125 = vmatpush1.bf16.msra.mxu1 %v1047_v7  ;;  %v1053_v14 = vpack.c.bf16 %v382_v12, %v380_v11  ;;  %v381_v16 = vld [vmem:[%s1773_s6 + $0x50] sm:$0xff]  ;;  %v384_v17 = vld [vmem:[%s1773_s6 + $0x68] sm:$0xff]  ;;  %v386_v18 = vld [vmem:[%s1773_s6 + $0x78] sm:$0xff]  ;;  %s1988_s5 = scalar_lea.sflag [#allocation4], %s230_s28  ;;  %s1340_s25 = scalar_lea.vmem %s1980_s18, 8192 }
  0x78   : > { %1050 = vmatprep.subr.bf16.mxu0 %v1049_v8  ;;  %1110 = vmatprep.subr.bf16.mxu1 %v1049_v8  ;;  %v1055_v19 = vpack.c.bf16 %v381_v16, %v379_v15  ;;  %v1057_v20 = vpack.c.bf16 %v386_v18, %v384_v17  ;;  %v383_v21 = vld [vmem:[%s1773_s6 + $0x60] sm:$0xff]  ;;  %v385_v22 = vld [vmem:[%s1773_s6 + $0x70] sm:$0xff]  ;;  %v388_v23 = vld [vmem:[%s1773_s6 + $0x88] sm:$0xff]  ;;  %p1341_p1 = scmp.ne.s32.totalorder %s1980_s18, %s1340_s25  ;;  %s1497_s2 = smov [#allocation7]  }
  0x79   : > { %v390_v24 = vld [vmem:[%s1773_s6 + $0x98] sm:$0xff]  ;;  %v1059_v25 = vpack.c.bf16 %v385_v22, %v383_v21  ;;  %v387_v27 = vld [vmem:[%s1773_s6 + $0x80] sm:$0xff]  ;;  %v389_v28 = vld [vmem:[%s1773_s6 + $0x90] sm:$0xff]  ;;  %s1037_s3 = sshll.u32 %s2107_s21, 1 }
  0x7a   : > { %v1061_v26 = vpack.c.bf16 %v390_v24, %v388_v23  ;;  %v392_v29 = vld [vmem:[%s1773_s6 + $0xa8] sm:$0xff]  ;;  %v394_v30 = vld [vmem:[%s1773_s6 + $0xb8] sm:$0xff]  ;;  %v1063_v31 = vpack.c.bf16 %v389_v28, %v387_v27  ;;  %v391_v33 = vld [vmem:[%s1773_s6 + $0xa0] sm:$0xff]  ;;  %s898_s29 = sadd.s32 %s1141_s26, %s1037_s3 }
  0x7b   : > { %1052 = vmatpush1.bf16.msra.mxu0 %v1051_v13  ;;  %1126 = vmatpush1.bf16.msra.mxu1 %v1051_v13  ;;  %v1065_v32 = vpack.c.bf16 %v394_v30, %v392_v29  ;;  %v393_v34 = vld [vmem:[%s1773_s6 + $0xb0] sm:$0xff]  ;;  %v396_v35 = vld [vmem:[%s1773_s6 + $0xc8] sm:$0xff]  ;;  %v398_v36 = vld [vmem:[%s1773_s6 + $0xd8] sm:$0xff]  ;;  %s1039_s19 = sshll.u32 %s898_s29, 7  ;;  %p2110_p12 = scmp.ne.s32.totalorder %s2108_s24, 0 }
  0x7c   : > { %1054 = vmatprep.subr.bf16.mxu0 %v1053_v14  ;;  %1111 = vmatprep.subr.bf16.mxu1 %v1053_v14  ;;  %v1067_v37 = vpack.c.bf16 %v393_v34, %v391_v33  ;;  %v395_v38 = vld [vmem:[%s1773_s6 + $0xc0] sm:$0xff]  ;;  %v1069_v39 = vpack.c.bf16 %v398_v36, %v396_v35  ;;  %v397_v40 = vld [vmem:[%s1773_s6 + $0xd0] sm:$0xff]  ;;  %v308_v41 = vld [vmem:[%s1766_s23 + $0x8] sm:$0xff] }
  0x7d   : > { %v340_v42 = vld [vmem:[%s1766_s23 + $0x108] sm:$0xff]  ;;  %v402_v44 = vld [vmem:[%s1773_s6 + $0xf8] sm:$0xff]  ;;  %563 = vmatprep.mubr.f32.mxu0 %v308_v41  ;;  %v1071_v45 = vpack.c.bf16 %v397_v40, %v395_v38  ;;  %v399_v47 = vld [vmem:[%s1773_s6 + $0xe0] sm:$0xff]  ;;  %p1342_p9 = pnand %p1341_p1, %p2110_p12 }
  0x7e   : > { %v400_v43 = vld [vmem:[%s1773_s6 + $0xe8] sm:$0xff]  ;;  %659 = vmatprep.mubr.f32.mxu1 %v340_v42  ;;  %v401_v48 = vld [vmem:[%s1773_s6 + $0xf0] sm:$0xff]  ;;  %v406_v50 = vld [vmem:[%s1773_s6 + $0x118] sm:$0xff] }
  0x7f   : > { %1056 = vmatpush1.bf16.msra.mxu0 %v1055_v19  ;;  %1127 = vmatpush1.bf16.msra.mxu1 %v1055_v19  ;;  %v1073_v46 = vpack.c.bf16 %v402_v44, %v400_v43  ;;  %v404_v49 = vld [vmem:[%s1773_s6 + $0x108] sm:$0xff]  ;;  %v1075_v51 = vpack.c.bf16 %v401_v48, %v399_v47  ;;  %v403_v53 = vld [vmem:[%s1773_s6 + $0x100] sm:$0xff]  ;;  %v405_v54 = vld [vmem:[%s1773_s6 + $0x110] sm:$0xff]  ;;  %p1343_p0 = pneg %p1342_p9 }
  0x80   : > { %1058 = vmatprep.subr.bf16.mxu0 %v1057_v20  ;;  %1112 = vmatprep.subr.bf16.mxu1 %v1057_v20  ;;  %v1077_v52 = vpack.c.bf16 %v406_v50, %v404_v49  ;;  %v408_v55 = vld [vmem:[%s1773_s6 + $0x128] sm:$0xff]  ;;  %v410_v56 = vld [vmem:[%s1773_s6 + $0x138] sm:$0xff]  ;;  %v1079_v57 = vpack.c.bf16 %v405_v54, %v403_v53  ;;  %v407_v59 = vld [vmem:[%s1773_s6 + $0x120] sm:$0xff] }
  0x81   : > { %v1081_v58 = vpack.c.bf16 %v410_v56, %v408_v55  ;;  %v409_v60 = vld [vmem:[%s1773_s6 + $0x130] sm:$0xff]  ;;  %v412_v61 = vld [vmem:[%s1773_s6 + $0x148] sm:$0xff]  ;;  %v414_v62 = vld [vmem:[%s1773_s6 + $0x158] sm:$0xff] }
  0x82   : > { %v1083_v63 = vpack.c.bf16 %v409_v60, %v407_v59  ;;  %v1085_v0 = vpack.c.bf16 %v414_v62, %v412_v61  ;;  %v411_v1 = vld [vmem:[%s1773_s6 + $0x140] sm:$0xff]  ;;  %v413_v2 = vld [vmem:[%s1773_s6 + $0x150] sm:$0xff]  ;;  %v416_v3 = vld [vmem:[%s1773_s6 + $0x168] sm:$0xff] }
  0x83   : > { %1060 = vmatpush1.bf16.msra.mxu0 %v1059_v25  ;;  %1128 = vmatpush1.bf16.msra.mxu1 %v1059_v25  ;;  %v418_v4 = vld [vmem:[%s1773_s6 + $0x178] sm:$0xff]  ;;  %v1087_v5 = vpack.c.bf16 %v413_v2, %v411_v1  ;;  %v415_v7 = vld [vmem:[%s1773_s6 + $0x160] sm:$0xff]  ;;  %v417_v8 = vld [vmem:[%s1773_s6 + $0x170] sm:$0xff] }
  0x84   : > { %1062 = vmatprep.subr.bf16.mxu0 %v1061_v26  ;;  %1113 = vmatprep.subr.bf16.mxu1 %v1061_v26  ;;  %v1089_v6 = vpack.c.bf16 %v418_v4, %v416_v3  ;;  %v420_v9 = vld [vmem:[%s1773_s6 + $0x188] sm:$0xff]  ;;  %v422_v10 = vld [vmem:[%s1773_s6 + $0x198] sm:$0xff]  ;;  %v1091_v11 = vpack.c.bf16 %v417_v8, %v415_v7  ;;  %v419_v13 = vld [vmem:[%s1773_s6 + $0x180] sm:$0xff] }
  0x85   : > { %v1093_v12 = vpack.c.bf16 %v422_v10, %v420_v9  ;;  %v421_v14 = vld [vmem:[%s1773_s6 + $0x190] sm:$0xff]  ;;  %v424_v15 = vld [vmem:[%s1773_s6 + $0x1a8] sm:$0xff]  ;;  %v426_v16 = vld [vmem:[%s1773_s6 + $0x1b8] sm:$0xff] }
  0x86   : > { %v1095_v17 = vpack.c.bf16 %v421_v14, %v419_v13  ;;  %v1097_v18 = vpack.c.bf16 %v426_v16, %v424_v15  ;;  %v423_v19 = vld [vmem:[%s1773_s6 + $0x1a0] sm:$0xff]  ;;  %v425_v20 = vld [vmem:[%s1773_s6 + $0x1b0] sm:$0xff]  ;;  %v428_v21 = vld [vmem:[%s1773_s6 + $0x1c8] sm:$0xff] }
  0x87   : > { %1064 = vmatpush1.bf16.msra.mxu0 %v1063_v31  ;;  %1129 = vmatpush1.bf16.msra.mxu1 %v1063_v31  ;;  %v430_v22 = vld [vmem:[%s1773_s6 + $0x1d8] sm:$0xff]  ;;  %v1099_v23 = vpack.c.bf16 %v425_v20, %v423_v19  ;;  %v427_v25 = vld [vmem:[%s1773_s6 + $0x1c0] sm:$0xff]  ;;  %v429_v26 = vld [vmem:[%s1773_s6 + $0x1d0] sm:$0xff] }
  0x88   : > { %1066 = vmatprep.subr.bf16.mxu0 %v1065_v32  ;;  %1114 = vmatprep.subr.bf16.mxu1 %v1065_v32  ;;  %v1101_v24 = vpack.c.bf16 %v430_v22, %v428_v21  ;;  %v432_v27 = vld [vmem:[%s1773_s6 + $0x1e8] sm:$0xff]  ;;  %v434_v28 = vld [vmem:[%s1773_s6 + $0x1f8] sm:$0xff]  ;;  %v1103_v29 = vpack.c.bf16 %v429_v26, %v427_v25  ;;  %v431_v31 = vld [vmem:[%s1773_s6 + $0x1e0] sm:$0xff] }
  0x89   : > { %v1105_v30 = vpack.c.bf16 %v434_v28, %v432_v27  ;;  %v433_v32 = vld [vmem:[%s1773_s6 + $0x1f0] sm:$0xff]  ;;  %v307_v34 = vld [vmem:[%s1766_s23] sm:$0xff]  ;;  %v310_v36 = vld [vmem:[%s1766_s23 + $0x18] sm:$0xff]  ;;  %s1344_s6 = sshll.u32 %s1497_s2, 4  ;;  %s1345_s6 = int_to_ptr.vmem [resolvable:$false] %s1344_s6 }
  0x8a   : > { %v1107_v33 = vpack.c.bf16 %v433_v32, %v431_v31  ;;  %v339_v35 = vld [vmem:[%s1766_s23 + $0x100] sm:$0xff]  ;;  %v309_v38 = vld [vmem:[%s1766_s23 + $0x10] sm:$0xff]  ;;  %v312_v40 = vld [vmem:[%s1766_s23 + $0x28] sm:$0xff]  ;;  %s1346_s7 = scalar_lea.vmem %s1345_s6, 16384  ;;  %p1347_p4 = scmp.lt.s32.totalorder %s1980_s18, %s1345_s6 }
  0x8b   : > { %1068 = vmatpush1.bf16.msra.mxu0 %v1067_v37  ;;  %1130 = vmatpush1.bf16.msra.mxu1 %v1067_v37  ;;  %v342_v37 = vld [vmem:[%s1766_s23 + $0x118] sm:$0xff]  ;;  %v344_v41 = vld [vmem:[%s1766_s23 + $0x128] sm:$0xff]  ;;  %v311_v42 = vld [vmem:[%s1766_s23 + $0x20] sm:$0xff]  ;;  %p1348_p10 = scmp.lt.s32.totalorder %s1346_s7, %s1340_s25 }
  0x8c   : > { %1070 = vmatprep.subr.bf16.mxu0 %v1069_v39  ;;  %1115 = vmatprep.subr.bf16.mxu1 %v1069_v39  ;;  %v341_v39 = vld [vmem:[%s1766_s23 + $0x110] sm:$0xff]  ;;  %v343_v43 = vld [vmem:[%s1766_s23 + $0x120] sm:$0xff]  ;;  %v314_v44 = vld [vmem:[%s1766_s23 + $0x38] sm:$0xff] }
  0x8d   : > { %v345_v47 = vld [vmem:[%s1766_s23 + $0x130] sm:$0xff]  ;;  %v316_v48 = vld [vmem:[%s1766_s23 + $0x48] sm:$0xff]  ;;  %v315_v50 = vld [vmem:[%s1766_s23 + $0x40] sm:$0xff]  ;;  %p1349_p8 = por %p1348_p10, %p1347_p4 }
  0x8e   : > { %v348_v49 = vld [vmem:[%s1766_s23 + $0x148] sm:$0xff]  ;;  %v350_v53 = vld [vmem:[%s1766_s23 + $0x158] sm:$0xff]  ;;  %v317_v54 = vld [vmem:[%s1766_s23 + $0x50] sm:$0xff] }
  0x8f   : > { %1072 = vmatpush1.bf16.msra.mxu0 %v1071_v45  ;;  %1131 = vmatpush1.bf16.msra.mxu1 %v1071_v45  ;;  %v346_v45 = vld [vmem:[%s1766_s23 + $0x138] sm:$0xff]  ;;  %v349_v55 = vld [vmem:[%s1766_s23 + $0x150] sm:$0xff]  ;;  %v320_v56 = vld [vmem:[%s1766_s23 + $0x68] sm:$0xff]  ;;  %p1350_p11 = pnand %p1349_p8, %p1343_p0 }
  0x90   : > { %1074 = vmatprep.subr.bf16.mxu0 %v1073_v46  ;;  %1116 = vmatprep.subr.bf16.mxu1 %v1073_v46  ;;  %v313_v46 = vld [vmem:[%s1766_s23 + $0x30] sm:$0xff]  ;;  %v351_v59 = vld [vmem:[%s1766_s23 + $0x160] sm:$0xff]  ;;  %v322_v60 = vld [vmem:[%s1766_s23 + $0x78] sm:$0xff] }
  0x91   : > { %v354_v61 = vld [vmem:[%s1766_s23 + $0x178] sm:$0xff]  ;;  %v321_v62 = vld [vmem:[%s1766_s23 + $0x70] sm:$0xff]  ;;  %v356_v1 = vld [vmem:[%s1766_s23 + $0x188] sm:$0xff] }
  0x92   : > { %v323_v2 = vld [vmem:[%s1766_s23 + $0x80] sm:$0xff]  ;;  %v326_v4 = vld [vmem:[%s1766_s23 + $0x98] sm:$0xff]  ;;  %v357_v7 = vld [vmem:[%s1766_s23 + $0x190] sm:$0xff] }
  0x93   : > { %1076 = vmatpush1.bf16.msra.mxu0 %v1075_v51  ;;  %1132 = vmatpush1.bf16.msra.mxu1 %v1075_v51  ;;  %v347_v51 = vld [vmem:[%s1766_s23 + $0x140] sm:$0xff]  ;;  %v328_v8 = vld [vmem:[%s1766_s23 + $0xa8] sm:$0xff]  ;;  %v362_v13 = vld [vmem:[%s1766_s23 + $0x1b8] sm:$0xff] }
  0x94   : > { %1078 = vmatprep.subr.bf16.mxu0 %v1077_v52  ;;  %1117 = vmatprep.subr.bf16.mxu1 %v1077_v52  ;;  %v318_v52 = vld [vmem:[%s1766_s23 + $0x58] sm:$0xff]  ;;  %v355_v3 = vld [vmem:[%s1766_s23 + $0x180] sm:$0xff]  ;;  %v360_v9 = vld [vmem:[%s1766_s23 + $0x1a8] sm:$0xff] }
  0x95   : > { %v327_v10 = vld [vmem:[%s1766_s23 + $0xa0] sm:$0xff]  ;;  %v329_v14 = vld [vmem:[%s1766_s23 + $0xb0] sm:$0xff]  ;;  %v332_v16 = vld [vmem:[%s1766_s23 + $0xc8] sm:$0xff] }
  0x96   : > { %v361_v15 = vld [vmem:[%s1766_s23 + $0x1b0] sm:$0xff]  ;;  %v363_v19 = vld [vmem:[%s1766_s23 + $0x1c0] sm:$0xff]  ;;  %v334_v20 = vld [vmem:[%s1766_s23 + $0xd8] sm:$0xff] }
  0x97   : > { %1080 = vmatpush1.bf16.msra.mxu0 %v1079_v57  ;;  %1133 = vmatpush1.bf16.msra.mxu1 %v1079_v57  ;;  %v352_v57 = vld [vmem:[%s1766_s23 + $0x168] sm:$0xff]  ;;  %v366_v21 = vld [vmem:[%s1766_s23 + $0x1d8] sm:$0xff]  ;;  %v333_v22 = vld [vmem:[%s1766_s23 + $0xd0] sm:$0xff] }
  0x98   : > { %1082 = vmatprep.subr.bf16.mxu0 %v1081_v58  ;;  %1118 = vmatprep.subr.bf16.mxu1 %v1081_v58  ;;  %v319_v58 = vld [vmem:[%s1766_s23 + $0x60] sm:$0xff]  ;;  %v368_v25 = vld [vmem:[%s1766_s23 + $0x1e8] sm:$0xff]  ;;  %v338_v28 = vld [vmem:[%s1766_s23 + $0xf8] sm:$0xff] }
  0x99   : > { %v335_v26 = vld [vmem:[%s1766_s23 + $0xe0] sm:$0xff]  ;;  %v369_v31 = vld [vmem:[%s1766_s23 + $0x1f0] sm:$0xff] }
  0x9a   : > { %v367_v27 = vld [vmem:[%s1766_s23 + $0x1e0] sm:$0xff] }
  0x9b   : > { %1084 = vmatpush1.bf16.msra.mxu0 %v1083_v63  ;;  %1134 = vmatpush1.bf16.msra.mxu1 %v1083_v63  ;;  %v353_v63 = vld [vmem:[%s1766_s23 + $0x170] sm:$0xff] }
  0x9c   : > { %1086 = vmatprep.subr.bf16.mxu0 %v1085_v0  ;;  %1119 = vmatprep.subr.bf16.mxu1 %v1085_v0  ;;  %v324_v0 = vld [vmem:[%s1766_s23 + $0x88] sm:$0xff] }
  0x9f   : > { %1088 = vmatpush1.bf16.msra.mxu0 %v1087_v5  ;;  %1135 = vmatpush1.bf16.msra.mxu1 %v1087_v5  ;;  %v358_v5 = vld [vmem:[%s1766_s23 + $0x198] sm:$0xff] }
  0xa0   : > { %1090 = vmatprep.subr.bf16.mxu0 %v1089_v6  ;;  %1120 = vmatprep.subr.bf16.mxu1 %v1089_v6  ;;  %v325_v6 = vld [vmem:[%s1766_s23 + $0x90] sm:$0xff] }
  0xa3   : > { %1092 = vmatpush1.bf16.msra.mxu0 %v1091_v11  ;;  %1136 = vmatpush1.bf16.msra.mxu1 %v1091_v11  ;;  %v359_v11 = vld [vmem:[%s1766_s23 + $0x1a0] sm:$0xff] }
  0xa4   : > { %1094 = vmatprep.subr.bf16.mxu0 %v1093_v12  ;;  %1121 = vmatprep.subr.bf16.mxu1 %v1093_v12  ;;  %v330_v12 = vld [vmem:[%s1766_s23 + $0xb8] sm:$0xff] }
  0xa7   : > { %1096 = vmatpush1.bf16.msra.mxu0 %v1095_v17  ;;  %1137 = vmatpush1.bf16.msra.mxu1 %v1095_v17  ;;  %v364_v17 = vld [vmem:[%s1766_s23 + $0x1c8] sm:$0xff] }
  0xa8   : > { %1098 = vmatprep.subr.bf16.mxu0 %v1097_v18  ;;  %1122 = vmatprep.subr.bf16.mxu1 %v1097_v18  ;;  %v331_v18 = vld [vmem:[%s1766_s23 + $0xc0] sm:$0xff] }
  0xab   : > { %1100 = vmatpush1.bf16.msra.mxu0 %v1099_v23  ;;  %1138 = vmatpush1.bf16.msra.mxu1 %v1099_v23  ;;  %v365_v23 = vld [vmem:[%s1766_s23 + $0x1d0] sm:$0xff] }
  0xac   : > { %1102 = vmatprep.subr.bf16.mxu0 %v1101_v24  ;;  %1123 = vmatprep.subr.bf16.mxu1 %v1101_v24  ;;  %v336_v24 = vld [vmem:[%s1766_s23 + $0xe8] sm:$0xff] }
  0xaf   : > { %1104 = vmatpush1.bf16.msra.mxu0 %v1103_v29  ;;  %1139 = vmatpush1.bf16.msra.mxu1 %v1103_v29  ;;  %v370_v29 = vld [vmem:[%s1766_s23 + $0x1f8] sm:$0xff] }
  0xb0   : > { %1106 = vmatprep.subr.bf16.mxu0 %v1105_v30  ;;  %1124 = vmatprep.subr.bf16.mxu1 %v1105_v30  ;;  %v337_v30 = vld [vmem:[%s1766_s23 + $0xf0] sm:$0xff]  ;;  %s1978_s23 = scalar_lea.hbm %s2109_s8, %s1039_s19 }
  0xb3   : > { %1108 = vmatpush1.bf16.msra.mxu0 %v1107_v33  ;;  %1140 = vmatpush1.bf16.msra.mxu1 %v1107_v33 }
  0xb6   : > { %564 = vmatmul.mubr.f32.vlgmr.msra.gmra.mrb[0].mxu0 %v307_v34  ;;  %660 = vmatmul.mubr.f32.vlgmr.msra.gmra.mrb[0].mxu1 %v339_v35 }
  0xb7   : > { %569 = vmatprep.mubr.f32.mxu0 %v310_v36  ;;  %665 = vmatprep.mubr.f32.mxu1 %v342_v37 }
  0xba   : > { %570 = vmatmul.mubr.f32.gmra.mrb[2].mxu0 %v309_v38  ;;  %666 = vmatmul.mubr.f32.gmra.mrb[2].mxu1 %v341_v39 }
  0xbb   : > { %575 = vmatprep.mubr.f32.mxu0 %v312_v40  ;;  %671 = vmatprep.mubr.f32.mxu1 %v344_v41 }
  0xbe   : > { %576 = vmatmul.mubr.f32.gmra.mrb[4].mxu0 %v311_v42  ;;  %672 = vmatmul.mubr.f32.gmra.mrb[4].mxu1 %v343_v43 }
  0xbf   : > { %581 = vmatprep.mubr.f32.mxu0 %v314_v44  ;;  %677 = vmatprep.mubr.f32.mxu1 %v346_v45 }
  0xc2   : > { %582 = vmatmul.mubr.f32.gmra.mrb[6].mxu0 %v313_v46  ;;  %678 = vmatmul.mubr.f32.gmra.mrb[6].mxu1 %v345_v47 }
  0xc3   : > { %587 = vmatprep.mubr.f32.mxu0 %v316_v48  ;;  %683 = vmatprep.mubr.f32.mxu1 %v348_v49 }
  0xc6   : > { %588 = vmatmul.mubr.f32.gmra.mrb[8].mxu0 %v315_v50  ;;  %684 = vmatmul.mubr.f32.gmra.mrb[8].mxu1 %v347_v51 }
  0xc7   : > { %593 = vmatprep.mubr.f32.mxu0 %v318_v52  ;;  %689 = vmatprep.mubr.f32.mxu1 %v350_v53 }
  0xca   : > { %594 = vmatmul.mubr.f32.gmra.mrb[10].mxu0 %v317_v54  ;;  %690 = vmatmul.mubr.f32.gmra.mrb[10].mxu1 %v349_v55 }
  0xcb   : > { %599 = vmatprep.mubr.f32.mxu0 %v320_v56  ;;  %695 = vmatprep.mubr.f32.mxu1 %v352_v57 }
  0xce   : > { %600 = vmatmul.mubr.f32.gmra.mrb[12].mxu0 %v319_v58  ;;  %696 = vmatmul.mubr.f32.gmra.mrb[12].mxu1 %v351_v59 }
  0xcf   : > { %605 = vmatprep.mubr.f32.mxu0 %v322_v60  ;;  %701 = vmatprep.mubr.f32.mxu1 %v354_v61 }
  0xd2   : > { %606 = vmatmul.mubr.f32.gmra.mrb[14].mxu0 %v321_v62  ;;  %702 = vmatmul.mubr.f32.gmra.mrb[14].mxu1 %v353_v63 }
  0xd3   : > { %611 = vmatprep.mubr.f32.mxu0 %v324_v0  ;;  %707 = vmatprep.mubr.f32.mxu1 %v356_v1 }
  0xd6   : > { %612 = vmatmul.mubr.f32.gmra.mrb[16].mxu0 %v323_v2  ;;  %708 = vmatmul.mubr.f32.gmra.mrb[16].mxu1 %v355_v3 }
  0xd7   : > { %617 = vmatprep.mubr.f32.mxu0 %v326_v4  ;;  %713 = vmatprep.mubr.f32.mxu1 %v358_v5 }
  0xda   : > { %618 = vmatmul.mubr.f32.gmra.mrb[18].mxu0 %v325_v6  ;;  %714 = vmatmul.mubr.f32.gmra.mrb[18].mxu1 %v357_v7 }
  0xdb   : > { %623 = vmatprep.mubr.f32.mxu0 %v328_v8  ;;  %719 = vmatprep.mubr.f32.mxu1 %v360_v9 }
  0xde   : > { %624 = vmatmul.mubr.f32.gmra.mrb[20].mxu0 %v327_v10  ;;  %720 = vmatmul.mubr.f32.gmra.mrb[20].mxu1 %v359_v11 }
  0xdf   : > { %629 = vmatprep.mubr.f32.mxu0 %v330_v12  ;;  %725 = vmatprep.mubr.f32.mxu1 %v362_v13 }
  0xe2   : > { %630 = vmatmul.mubr.f32.gmra.mrb[22].mxu0 %v329_v14  ;;  %726 = vmatmul.mubr.f32.gmra.mrb[22].mxu1 %v361_v15 }
  0xe3   : > { %635 = vmatprep.mubr.f32.mxu0 %v332_v16  ;;  %731 = vmatprep.mubr.f32.mxu1 %v364_v17 }
  0xe6   : > { %636 = vmatmul.mubr.f32.gmra.mrb[24].mxu0 %v331_v18  ;;  %732 = vmatmul.mubr.f32.gmra.mrb[24].mxu1 %v363_v19 }
  0xe7   : > { %641 = vmatprep.mubr.f32.mxu0 %v334_v20  ;;  %737 = vmatprep.mubr.f32.mxu1 %v366_v21 }
  0xea   : > { %642 = vmatmul.mubr.f32.gmra.mrb[26].mxu0 %v333_v22  ;;  %738 = vmatmul.mubr.f32.gmra.mrb[26].mxu1 %v365_v23 }
  0xeb   : > { %647 = vmatprep.mubr.f32.mxu0 %v336_v24  ;;  %743 = vmatprep.mubr.f32.mxu1 %v368_v25 }
  0xee   : > { %648 = vmatmul.mubr.f32.gmra.mrb[28].mxu0 %v335_v26  ;;  %744 = vmatmul.mubr.f32.gmra.mrb[28].mxu1 %v367_v27 }
  0xef   : > { %653 = vmatprep.mubr.f32.mxu0 %v338_v28  ;;  %749 = vmatprep.mubr.f32.mxu1 %v370_v29 }
  0xf2   : > { %654 = vmatmul.mubr.f32.gmra.mrb[30].mxu0 %v337_v30  ;;  %750 = vmatmul.mubr.f32.gmra.mrb[30].mxu1 %v369_v31 }
 0x189   : > { %v565_v32 = vpop.f32.mrb[0].mxu0  ;;  %v661_v33 = vpop.f32.mrb[0].mxu1 }
 0x18a   : > { %v567_v34 = vpop.f32.mrb[1].mxu0  ;;  %v663_v35 = vpop.f32.mrb[1].mxu1  ;;  %820 = vst [vmem:[%s1910_s12] sm:$0xff] %v565_v32  ;;  %852 = vst [vmem:[%s1910_s12 + $0x100] sm:$0xff] %v661_v33 }
 0x18b   : > { %821 = vst [vmem:[%s1910_s12 + $0x8] sm:$0xff] %v567_v34  ;;  %853 = vst [vmem:[%s1910_s12 + $0x108] sm:$0xff] %v663_v35 }
 0x18d   : > { %v571_v36 = vpop.f32.mrb[2].mxu0  ;;  %v667_v37 = vpop.f32.mrb[2].mxu1 }
 0x18e   : > { %v573_v38 = vpop.f32.mrb[3].mxu0  ;;  %v669_v39 = vpop.f32.mrb[3].mxu1  ;;  %822 = vst [vmem:[%s1910_s12 + $0x10] sm:$0xff] %v571_v36  ;;  %854 = vst [vmem:[%s1910_s12 + $0x110] sm:$0xff] %v667_v37 }
 0x18f   : > { %823 = vst [vmem:[%s1910_s12 + $0x18] sm:$0xff] %v573_v38  ;;  %855 = vst [vmem:[%s1910_s12 + $0x118] sm:$0xff] %v669_v39 }
 0x191   : > { %v577_v40 = vpop.f32.mrb[4].mxu0  ;;  %v673_v41 = vpop.f32.mrb[4].mxu1 }
 0x192   : > { %v579_v42 = vpop.f32.mrb[5].mxu0  ;;  %v675_v43 = vpop.f32.mrb[5].mxu1  ;;  %824 = vst [vmem:[%s1910_s12 + $0x20] sm:$0xff] %v577_v40  ;;  %856 = vst [vmem:[%s1910_s12 + $0x120] sm:$0xff] %v673_v41 }
 0x193   : > { %825 = vst [vmem:[%s1910_s12 + $0x28] sm:$0xff] %v579_v42  ;;  %857 = vst [vmem:[%s1910_s12 + $0x128] sm:$0xff] %v675_v43 }
 0x195   : > { %v583_v44 = vpop.f32.mrb[6].mxu0  ;;  %v679_v45 = vpop.f32.mrb[6].mxu1 }
 0x196   : > { %v585_v46 = vpop.f32.mrb[7].mxu0  ;;  %v681_v47 = vpop.f32.mrb[7].mxu1  ;;  %826 = vst [vmem:[%s1910_s12 + $0x30] sm:$0xff] %v583_v44  ;;  %858 = vst [vmem:[%s1910_s12 + $0x130] sm:$0xff] %v679_v45 }
 0x197   : > { %827 = vst [vmem:[%s1910_s12 + $0x38] sm:$0xff] %v585_v46  ;;  %859 = vst [vmem:[%s1910_s12 + $0x138] sm:$0xff] %v681_v47 }
 0x199   : > { %v589_v48 = vpop.f32.mrb[8].mxu0  ;;  %v685_v49 = vpop.f32.mrb[8].mxu1 }
 0x19a   : > { %v591_v50 = vpop.f32.mrb[9].mxu0  ;;  %v687_v51 = vpop.f32.mrb[9].mxu1  ;;  %828 = vst [vmem:[%s1910_s12 + $0x40] sm:$0xff] %v589_v48  ;;  %860 = vst [vmem:[%s1910_s12 + $0x140] sm:$0xff] %v685_v49 }
 0x19b   : > { %829 = vst [vmem:[%s1910_s12 + $0x48] sm:$0xff] %v591_v50  ;;  %861 = vst [vmem:[%s1910_s12 + $0x148] sm:$0xff] %v687_v51 }
 0x19d   : > { %v595_v52 = vpop.f32.mrb[10].mxu0  ;;  %v691_v53 = vpop.f32.mrb[10].mxu1 }
 0x19e   : > { %v597_v54 = vpop.f32.mrb[11].mxu0  ;;  %v693_v55 = vpop.f32.mrb[11].mxu1  ;;  %830 = vst [vmem:[%s1910_s12 + $0x50] sm:$0xff] %v595_v52  ;;  %862 = vst [vmem:[%s1910_s12 + $0x150] sm:$0xff] %v691_v53 }
 0x19f   : > { %831 = vst [vmem:[%s1910_s12 + $0x58] sm:$0xff] %v597_v54  ;;  %863 = vst [vmem:[%s1910_s12 + $0x158] sm:$0xff] %v693_v55 }
 0x1a1   : > { %v601_v56 = vpop.f32.mrb[12].mxu0  ;;  %v697_v57 = vpop.f32.mrb[12].mxu1 }
 0x1a2   : > { %v603_v58 = vpop.f32.mrb[13].mxu0  ;;  %v699_v59 = vpop.f32.mrb[13].mxu1  ;;  %832 = vst [vmem:[%s1910_s12 + $0x60] sm:$0xff] %v601_v56  ;;  %864 = vst [vmem:[%s1910_s12 + $0x160] sm:$0xff] %v697_v57 }
 0x1a3   : > { %833 = vst [vmem:[%s1910_s12 + $0x68] sm:$0xff] %v603_v58  ;;  %865 = vst [vmem:[%s1910_s12 + $0x168] sm:$0xff] %v699_v59 }
 0x1a5   : > { %v607_v60 = vpop.f32.mrb[14].mxu0  ;;  %v703_v61 = vpop.f32.mrb[14].mxu1 }
 0x1a6   : > { %v609_v62 = vpop.f32.mrb[15].mxu0  ;;  %v705_v63 = vpop.f32.mrb[15].mxu1  ;;  %834 = vst [vmem:[%s1910_s12 + $0x70] sm:$0xff] %v607_v60  ;;  %866 = vst [vmem:[%s1910_s12 + $0x170] sm:$0xff] %v703_v61 }
 0x1a7   : > { %835 = vst [vmem:[%s1910_s12 + $0x78] sm:$0xff] %v609_v62  ;;  %867 = vst [vmem:[%s1910_s12 + $0x178] sm:$0xff] %v705_v63 }
 0x1a9   : > { %v613_v0 = vpop.f32.mrb[16].mxu0  ;;  %v709_v1 = vpop.f32.mrb[16].mxu1 }
 0x1aa   : > { %v615_v2 = vpop.f32.mrb[17].mxu0  ;;  %v711_v3 = vpop.f32.mrb[17].mxu1  ;;  %836 = vst [vmem:[%s1910_s12 + $0x80] sm:$0xff] %v613_v0  ;;  %868 = vst [vmem:[%s1910_s12 + $0x180] sm:$0xff] %v709_v1 }
 0x1ab   : > { %837 = vst [vmem:[%s1910_s12 + $0x88] sm:$0xff] %v615_v2  ;;  %869 = vst [vmem:[%s1910_s12 + $0x188] sm:$0xff] %v711_v3 }
 0x1ad   : > { %v619_v4 = vpop.f32.mrb[18].mxu0  ;;  %v715_v5 = vpop.f32.mrb[18].mxu1 }
 0x1ae   : > { %v621_v6 = vpop.f32.mrb[19].mxu0  ;;  %v717_v7 = vpop.f32.mrb[19].mxu1  ;;  %838 = vst [vmem:[%s1910_s12 + $0x90] sm:$0xff] %v619_v4  ;;  %870 = vst [vmem:[%s1910_s12 + $0x190] sm:$0xff] %v715_v5 }
 0x1af   : > { %839 = vst [vmem:[%s1910_s12 + $0x98] sm:$0xff] %v621_v6  ;;  %871 = vst [vmem:[%s1910_s12 + $0x198] sm:$0xff] %v717_v7 }
 0x1b1   : > { %v625_v8 = vpop.f32.mrb[20].mxu0  ;;  %v721_v9 = vpop.f32.mrb[20].mxu1 }
 0x1b2   : > { %v627_v10 = vpop.f32.mrb[21].mxu0  ;;  %v723_v11 = vpop.f32.mrb[21].mxu1  ;;  %840 = vst [vmem:[%s1910_s12 + $0xa0] sm:$0xff] %v625_v8  ;;  %872 = vst [vmem:[%s1910_s12 + $0x1a0] sm:$0xff] %v721_v9 }
 0x1b3   : > { %841 = vst [vmem:[%s1910_s12 + $0xa8] sm:$0xff] %v627_v10  ;;  %873 = vst [vmem:[%s1910_s12 + $0x1a8] sm:$0xff] %v723_v11 }
 0x1b5   : > { %v631_v12 = vpop.f32.mrb[22].mxu0  ;;  %v727_v13 = vpop.f32.mrb[22].mxu1 }
 0x1b6   : > { %v633_v14 = vpop.f32.mrb[23].mxu0  ;;  %v729_v15 = vpop.f32.mrb[23].mxu1  ;;  %842 = vst [vmem:[%s1910_s12 + $0xb0] sm:$0xff] %v631_v12  ;;  %874 = vst [vmem:[%s1910_s12 + $0x1b0] sm:$0xff] %v727_v13 }
 0x1b7   : > { %843 = vst [vmem:[%s1910_s12 + $0xb8] sm:$0xff] %v633_v14  ;;  %875 = vst [vmem:[%s1910_s12 + $0x1b8] sm:$0xff] %v729_v15 }
 0x1b9   : > { %v637_v16 = vpop.f32.mrb[24].mxu0  ;;  %v733_v17 = vpop.f32.mrb[24].mxu1 }
 0x1ba   : > { %v639_v18 = vpop.f32.mrb[25].mxu0  ;;  %v735_v19 = vpop.f32.mrb[25].mxu1  ;;  %844 = vst [vmem:[%s1910_s12 + $0xc0] sm:$0xff] %v637_v16  ;;  %876 = vst [vmem:[%s1910_s12 + $0x1c0] sm:$0xff] %v733_v17 }
 0x1bb   : > { %845 = vst [vmem:[%s1910_s12 + $0xc8] sm:$0xff] %v639_v18  ;;  %877 = vst [vmem:[%s1910_s12 + $0x1c8] sm:$0xff] %v735_v19 }
 0x1bd   : > { %v643_v20 = vpop.f32.mrb[26].mxu0  ;;  %v739_v21 = vpop.f32.mrb[26].mxu1 }
 0x1be   : > { %v645_v22 = vpop.f32.mrb[27].mxu0  ;;  %v741_v23 = vpop.f32.mrb[27].mxu1  ;;  %846 = vst [vmem:[%s1910_s12 + $0xd0] sm:$0xff] %v643_v20  ;;  %878 = vst [vmem:[%s1910_s12 + $0x1d0] sm:$0xff] %v739_v21 }
 0x1bf   : > { %847 = vst [vmem:[%s1910_s12 + $0xd8] sm:$0xff] %v645_v22  ;;  %879 = vst [vmem:[%s1910_s12 + $0x1d8] sm:$0xff] %v741_v23 }
 0x1c1   : > { %v649_v24 = vpop.f32.mrb[28].mxu0  ;;  %v745_v25 = vpop.f32.mrb[28].mxu1 }
 0x1c2   : > { %v651_v26 = vpop.f32.mrb[29].mxu0  ;;  %v747_v27 = vpop.f32.mrb[29].mxu1  ;;  %848 = vst [vmem:[%s1910_s12 + $0xe0] sm:$0xff] %v649_v24  ;;  %880 = vst [vmem:[%s1910_s12 + $0x1e0] sm:$0xff] %v745_v25 }
 0x1c3   : > { %849 = vst [vmem:[%s1910_s12 + $0xe8] sm:$0xff] %v651_v26  ;;  %881 = vst [vmem:[%s1910_s12 + $0x1e8] sm:$0xff] %v747_v27 }
 0x1c5   : > { %v655_v28 = vpop.f32.mrb[30].mxu0  ;;  %v751_v29 = vpop.f32.mrb[30].mxu1 }
 0x1c6   : > { %v657_v30 = vpop.f32.mrb[31].mxu0  ;;  %v753_v31 = vpop.f32.mrb[31].mxu1  ;;  %850 = vst [vmem:[%s1910_s12 + $0xf0] sm:$0xff] %v655_v28  ;;  %882 = vst [vmem:[%s1910_s12 + $0x1f0] sm:$0xff] %v751_v29 }
 0x1c7   : > { %851 = vst [vmem:[%s1910_s12 + $0xf8] sm:$0xff] %v657_v30  ;;  %883 = vst [vmem:[%s1910_s12 + $0x1f8] sm:$0xff] %v753_v31 }
 0x1c8   : > { %1353 = shalt.err (!%p1350_p11)
}
 0x1c9   : > { %s1354_s28 = scalar_lea.hbm %s1978_s23, 8192  ;;  %s1358_s26 = scalar_lea.hbm %s2109_s8, 49152 }
 0x1ca   : > { %p1355_p2 = scmp.ne.s32.totalorder %s1978_s23, %s1354_s28  ;;  %p1359_p7 = scmp.lt.u32.totalorder %s1978_s23, %s2109_s8 }
 0x1cb   : > { %p1360_p13 = scmp.lt.u32.totalorder %s1358_s26, %s1354_s28  ;;  %p1362_p1 = scmp.lt.u32.totalorder %s1354_s28, %s1978_s23 }
 0x1cc   : > { %p1356_p5 = pnand %p1355_p2, %p2110_p12 }
 0x1cd   : > { %p1361_p6 = por %p1360_p13, %p1359_p7 }
 0x1ce   : > { %p1357_p3 = pneg %p1356_p5 }
 0x1cf   : > { %p1363_p9 = por %p1362_p1, %p1361_p6 }
 0x1d1   : > { %p1364_p0 = pnand %p1363_p9, %p1357_p3 }
 0x1d3   : > { %1367 = shalt.err (!%p1364_p0)
}
 0x1d4   : > { %s1498_s19 = smov 256   ;;  %s1499_s4 = smov 768  }
 0x1d5   : > { %s1500_s15 = smov 16  }
 0x1d6   : > { %1146 = dma.vmem_to_hbm [thread:$0]  (%p2110_p12), %s1980_s18, 8192, %s1978_s23, %s1988_s5, %s1498_s19, %s1499_s4, %s1500_s15  }
 0x1d7 PF: > { %p1160_p4 = scmp.ge.s32.totalorder %s1490_s22, 2  ;;  %s916_s25 = sand.u32 1, %s1438_s9  }
 0x1d8   : > { %p2111_p10 = scmp.ne.s32.totalorder %s2100_s27, 0  ;;  %s917_s2 = scalar_lea.sflag [#allocation4], %s916_s25 }
 0x1da   : > { %p1156_p8 = pnand %p1160_p4, %p2111_p10 }
 0x1dc   : > { %1433 = dma.done.wait (!%p1156_p8), %s917_s2, 8192  }
 0x1dd   : > { %1435 = vsyncadd (!%p1156_p8), %s917_s2, 4294959104  ;;  %s21_s22 = sadd.s32 1, %s1490_s22   ;;  %s2113_s18 = sld [smem:[#allocation15_spill]] }
 0x1de   : > { %p2017_p11 = scmp.ge.s32.totalorder %s21_s22, 8   ;;  %s2114_s19 = sld [smem:[#allocation12_spill]] }
 0x1df   : > { %s2115_s27 = sld [smem:[#allocation13_spill]]  ;;  %s2116_s21 = sld [smem:[#allocation14_spill]] }
 0x1e0   : > { %s2117_s9 = smov %s1442_s10  ;;  %s2118_s10 = smov %s1446_s11 }
 0x1e1   : > { %s2119_s11 = smov %s1710_s30  ;;  %s2120_s12 = smov %s1454_s13 }
 0x1e2   : > { %s2121_s13 = smov %s1458_s14  ;;  %s2123_s15 = smov %s1466_s16 }
 0x1e3   : > { %s2122_s14 = smov %s2113_s18  ;;  %s2124_s16 = smov %s1470_s17 }
 0x1e4   : > { %s2125_s17 = smov %s1707_s0  ;;  %s2126_s18 = smov %s1482_s20 }
 0x1e5   : > { %s2127_s20 = smov %s2115_s27  ;;  %20 = sbr.rel (!%p2017_p11) target bundleno = 15 (0xf), region = 90 }
 0x1ec   :  { %922 = vsyncpa [#allocation3], 1 }
 0x1ed   :  { %924 = vsyncpa [#allocation3 + $0x1], 1 }
 0x1ee   :  { %925 = vsyncpa [#allocation6], 1 }
 0x1ef   :  { %927 = vsyncpa [#allocation6 + $0x1], 1 }
 0x1f0   :  { %928 = vsyncpa [#allocation4], 1 }
 0x1f1   :  { %930 = vsyncpa [#allocation4 + $0x1], 1 }

</bundles_post_ra>
